<compile_context>
chip_gen: v6e
topology: v6e:2x2x1
jax: 0.10.0
libtpu: 0.0.40
codegen_flags: <defaults>
</compile_context>

<pallas_src>
import functools

import jax
import jax.numpy as jnp
from jax.experimental import pallas as pl
from jax.experimental.pallas import tpu as pltpu


# ----------------------------- Pallas kernel ---------------------------------
def _double_conv_kernel(H, W, x_ref, w1_ref, b1_ref, w2_ref, b2_ref, mask_ref,
                        o_ref):
    """Per-batch fused (conv3x3 + folded-BN bias + ReLU) x 2.

    x_ref   : (1, Cin, (H+2)*(W+2)+2) f32  zero-padded frame, flattened, +2 slack
    w1_ref  : (Cmid, 9*Cin)  bf16          BN1 scale folded in
    b1_ref  : (Cmid, 1)      f32           conv1 bias + BN1 shift folded
    w2_ref  : (Cout, 9*Cmid) bf16
    b2_ref  : (Cout, 1)      f32
    mask_ref: (1, H*(W+2))   f32           1 for valid columns, 0 for the 2 wrap cols
    o_ref   : (1, Cout, H*(W+2)) f32       "wide" output (junk cols sliced off in XLA)
    """
    W2 = W + 2
    Mw = H * W2                      # wide spatial extent (keeps 2 junk cols/row)
    Cmid = w1_ref.shape[0]

    x = x_ref[0]                     # (Cin, (H+2)*(W+2)+2) f32

    def taps(a):
        # tap (dy, dx) -> lane offset dy*(W+2)+dx; stack along K (channel*tap) axis
        return jnp.concatenate(
            [a[:, dy * W2 + dx: dy * W2 + dx + Mw]
             for dy in range(3) for dx in range(3)],
            axis=0)

    # ---- conv1: single im2col matmul (K = 9*Cin) + bias + ReLU ----
    p1 = taps(x).astype(jnp.bfloat16)                            # (9*Cin, Mw)
    acc1 = jnp.dot(w1_ref[...], p1, preferred_element_type=jnp.float32)
    h = jnp.maximum(acc1 + b1_ref[...], 0.0) * mask_ref[...]     # (Cmid, Mw) f32

    # Re-embed h into its zero-padded (H+2, W+2) frame (flattened, +2 slack):
    # placing h at lane offset W2+1 makes the masked wrap columns land exactly on
    # the left/right border cells, so only tiny head/tail zero strips are needed.
    zl = jnp.zeros((Cmid, W2 + 1), jnp.float32)
    zr = jnp.zeros((Cmid, W2 + 1), jnp.float32)
    hp = jnp.concatenate([zl, h, zr], axis=1)                    # (Cmid, (H+2)*W2+2)

    # ---- conv2: single im2col matmul (K = 9*Cmid) + bias + ReLU ----
    p2 = taps(hp).astype(jnp.bfloat16)                           # (9*Cmid, Mw)
    acc2 = jnp.dot(w2_ref[...], p2, preferred_element_type=jnp.float32)
    o_ref[0] = jnp.maximum(acc2 + b2_ref[...], 0.0)


def double_conv_pallas(xp_flat, w1m, b1, w2m, b2, mask, H, W):
    N, Cin, PF = xp_flat.shape
    Cmid = w1m.shape[0]
    Cout = w2m.shape[0]
    Mw = H * (W + 2)
    kernel = functools.partial(_double_conv_kernel, H, W)
    return pl.pallas_call(
        kernel,
        out_shape=jax.ShapeDtypeStruct((N, Cout, Mw), jnp.float32),
        grid=(N,),
        in_specs=[
            pl.BlockSpec((1, Cin, PF), lambda n: (n, 0, 0)),
            pl.BlockSpec((Cmid, 9 * Cin), lambda n: (0, 0)),
            pl.BlockSpec((Cmid, 1), lambda n: (0, 0)),
            pl.BlockSpec((Cout, 9 * Cmid), lambda n: (0, 0)),
            pl.BlockSpec((Cout, 1), lambda n: (0, 0)),
            pl.BlockSpec((1, Mw), lambda n: (0, 0)),
        ],
        out_specs=pl.BlockSpec((1, Cout, Mw), lambda n: (n, 0, 0)),
        compiler_params=pltpu.CompilerParams(dimension_semantics=("parallel",)),
    )(xp_flat, w1m, b1, w2m, b2, mask)


# ----------------------------- JAX wrapper ------------------------------------
def double_conv_forward(x, params):
    """double_conv.forward: x (N, Cin, H, W) f32 NCHW -> (N, Cout, H, W) f32."""
    N, Cin, H, W = x.shape
    W2 = W + 2
    # SAME-conv spatial zero padding done once in XLA; flatten spatially so the
    # lane axis is the (padded) spatial axis. +2 slack lanes so every tap slice
    # of length H*(W+2) stays in bounds (slack only feeds discarded columns).
    xp = jnp.pad(x, ((0, 0), (0, 0), (1, 1), (1, 1)))
    xp_flat = xp.reshape(N, Cin, (H + 2) * W2)
    xp_flat = jnp.pad(xp_flat, ((0, 0), (0, 0), (0, 2)))
    # validity mask over the "wide" (H, W+2) layout: zero the 2 wrap columns/row
    col = jnp.arange(H * W2) % W2
    mask = (col < W).astype(jnp.float32)[None, :]                # (1, H*(W+2))

    out_wide = double_conv_pallas(xp_flat, params["w1m"], params["b1"],
                                  params["w2m"], params["b2"], mask, H, W)
    Cout = params["w2m"].shape[0]
    return out_wide.reshape(N, Cout, H, W2)[:, :, :, :W]


def fold_conv_bn(w_oihw, conv_b, gamma, beta, mean, var, eps=1e-5):
    """Fold inference BatchNorm into the conv: returns (Cout, 9*Cin) bf16 weights
    (tap-major, channel-minor, matching the kernel's patch layout) and (Cout, 1)
    f32 bias."""
    scale = gamma / jnp.sqrt(var + eps)                          # (O,)
    w = w_oihw * scale[:, None, None, None]                      # (O, I, 3, 3)
    b = (conv_b - mean) * scale + beta                           # (O,)
    O, I = w.shape[0], w.shape[1]
    wm = jnp.transpose(w, (0, 2, 3, 1)).reshape(O, 9 * I)        # (O, (ky,kx,c))
    return wm.astype(jnp.bfloat16), b.reshape(O, 1).astype(jnp.float32)


# ----------------------------- Reference (pure JAX) ---------------------------
def double_conv_ref(x, w1, b1c, g1, be1, m1, v1, w2, b2c, g2, be2, m2, v2,
                    eps=1e-5):
    """Pure-XLA reference with the same bf16-operand / f32-accumulate numerics."""
    def block(xx, w, bc, g, be, mu, var):
        s = g / jnp.sqrt(var + eps)
        wf = (w * s[:, None, None, None]).astype(jnp.bfloat16)
        bf = (bc - mu) * s + be
        y = jax.lax.conv_general_dilated(
            xx.astype(jnp.bfloat16), wf, (1, 1), "SAME",
            dimension_numbers=("NCHW", "OIHW", "NCHW"),
            preferred_element_type=jnp.float32)
        return jnp.maximum(y + bf[None, :, None, None], 0.0)

    h = block(x, w1, b1c, g1, be1, m1, v1)
    return block(h, w2, b2c, g2, be2, m2, v2)


# ----------------------------- main -------------------------------------------
if __name__ == "__main__":
    key = jax.random.PRNGKey(0)
    ks = jax.random.split(key, 13)

    N, in_ch, out_ch, H, W = 2, 8, 8, 16, 16
    x = jax.random.normal(ks[0], (N, in_ch, H, W), jnp.float32)

    eps = 1e-5
    # conv1: Conv2d(in_ch, out_ch, 3, padding=1) + BN(out_ch)
    w1 = 0.1 * jax.random.normal(ks[1], (out_ch, in_ch, 3, 3), jnp.float32)
    b1c = 0.1 * jax.random.normal(ks[2], (out_ch,), jnp.float32)
    g1 = 1.0 + 0.1 * jax.random.normal(ks[3], (out_ch,), jnp.float32)
    be1 = 0.1 * jax.random.normal(ks[4], (out_ch,), jnp.float32)
    m1 = 0.1 * jax.random.normal(ks[5], (out_ch,), jnp.float32)
    v1 = 1.0 + jnp.abs(jax.random.normal(ks[6], (out_ch,), jnp.float32))
    # conv2: Conv2d(out_ch, out_ch, 3, padding=1) + BN(out_ch)
    w2 = 0.1 * jax.random.normal(ks[7], (out_ch, out_ch, 3, 3), jnp.float32)
    b2c = 0.1 * jax.random.normal(ks[8], (out_ch,), jnp.float32)
    g2 = 1.0 + 0.1 * jax.random.normal(ks[9], (out_ch,), jnp.float32)
    be2 = 0.1 * jax.random.normal(ks[10], (out_ch,), jnp.float32)
    m2 = 0.1 * jax.random.normal(ks[11], (out_ch,), jnp.float32)
    v2 = 1.0 + jnp.abs(jax.random.normal(ks[12], (out_ch,), jnp.float32))

    w1m, b1f = fold_conv_bn(w1, b1c, g1, be1, m1, v1, eps)
    w2m, b2f = fold_conv_bn(w2, b2c, g2, be2, m2, v2, eps)
    params = {"w1m": w1m, "b1": b1f, "w2m": w2m, "b2": b2f}

    out = jax.block_until_ready(double_conv_forward(x, params))
    assert out.shape == (N, out_ch, H, W)

    ref = double_conv_ref(x, w1, b1c, g1, be1, m1, v1,
                          w2, b2c, g2, be2, m2, v2, eps)
    err = float(jnp.max(jnp.abs(out - ref)))
    assert jnp.allclose(out, ref, atol=5e-3, rtol=5e-3), err

    print("KERNEL_OK")
</pallas_src>

<mosaic_0001>
module attributes {stable_mosaic.version = 11 : i64} {
  func.func @_double_conv_kernel(%arg0: i32, %arg1: memref<1x8x326xf32, #tpu.memory_space<vmem>>, %arg2: memref<8x72xbf16, #tpu.memory_space<vmem>>, %arg3: memref<8x1xf32, #tpu.memory_space<vmem>>, %arg4: memref<8x72xbf16, #tpu.memory_space<vmem>>, %arg5: memref<8x1xf32, #tpu.memory_space<vmem>>, %arg6: memref<1x288xf32, #tpu.memory_space<vmem>>, %arg7: memref<1x8x288xf32, #tpu.memory_space<vmem>>) attributes {dimension_semantics = [#tpu.dimension_semantics<parallel>], iteration_bounds = array<i64: 2>, scalar_prefetch = 0 : i64, scratch_operands = 0 : i64, tpu.core_type = #tpu.core_type<tc>, window_params = [{transform_indices = @transform_0, window_bounds = array<i64: 1, 8, 326>}, {pipeline_mode = #tpu.pipeline_mode<synchronous>, transform_indices = @transform_1, window_bounds = array<i64: 8, 72>}, {pipeline_mode = #tpu.pipeline_mode<synchronous>, transform_indices = @transform_2, window_bounds = array<i64: 8, 1>}, {pipeline_mode = #tpu.pipeline_mode<synchronous>, transform_indices = @transform_3, window_bounds = array<i64: 8, 72>}, {pipeline_mode = #tpu.pipeline_mode<synchronous>, transform_indices = @transform_4, window_bounds = array<i64: 8, 1>}, {pipeline_mode = #tpu.pipeline_mode<synchronous>, transform_indices = @transform_5, window_bounds = array<i64: 1, 288>}, {transform_indices = @transform_6, window_bounds = array<i64: 1, 8, 288>}]} {
    %c0 = arith.constant 0 : index
    %c0_0 = arith.constant 0 : index
    %c0_1 = arith.constant 0 : index
    %0 = vector.load %arg1[%c0, %c0_0, %c0_1] : memref<1x8x326xf32, #tpu.memory_space<vmem>>, vector<1x8x326xf32>
    %1 = vector.shape_cast %0 : vector<1x8x326xf32> to vector<8x326xf32>
    %2 = vector.extract_strided_slice %1 {offsets = [0, 0], sizes = [8, 288], strides = [1, 1]} : vector<8x326xf32> to vector<8x288xf32>
    %3 = vector.extract_strided_slice %1 {offsets = [0, 1], sizes = [8, 288], strides = [1, 1]} : vector<8x326xf32> to vector<8x288xf32>
    %4 = vector.extract_strided_slice %1 {offsets = [0, 2], sizes = [8, 288], strides = [1, 1]} : vector<8x326xf32> to vector<8x288xf32>
    %5 = vector.extract_strided_slice %1 {offsets = [0, 18], sizes = [8, 288], strides = [1, 1]} : vector<8x326xf32> to vector<8x288xf32>
    %6 = vector.extract_strided_slice %1 {offsets = [0, 19], sizes = [8, 288], strides = [1, 1]} : vector<8x326xf32> to vector<8x288xf32>
    %7 = vector.extract_strided_slice %1 {offsets = [0, 20], sizes = [8, 288], strides = [1, 1]} : vector<8x326xf32> to vector<8x288xf32>
    %8 = vector.extract_strided_slice %1 {offsets = [0, 36], sizes = [8, 288], strides = [1, 1]} : vector<8x326xf32> to vector<8x288xf32>
    %9 = vector.extract_strided_slice %1 {offsets = [0, 37], sizes = [8, 288], strides = [1, 1]} : vector<8x326xf32> to vector<8x288xf32>
    %10 = vector.extract_strided_slice %1 {offsets = [0, 38], sizes = [8, 288], strides = [1, 1]} : vector<8x326xf32> to vector<8x288xf32>
    %11 = tpu.concatenate %2, %3, %4, %5, %6, %7, %8, %9, %10 in 0 : vector<8x288xf32>, vector<8x288xf32>, vector<8x288xf32>, vector<8x288xf32>, vector<8x288xf32>, vector<8x288xf32>, vector<8x288xf32>, vector<8x288xf32>, vector<8x288xf32> -> vector<72x288xf32>
    %12 = arith.truncf %11 : vector<72x288xf32> to vector<72x288xbf16>
    %c0_2 = arith.constant 0 : index
    %c0_3 = arith.constant 0 : index
    %13 = vector.load %arg2[%c0_2, %c0_3] : memref<8x72xbf16, #tpu.memory_space<vmem>>, vector<8x72xbf16>
    %cst = arith.constant dense<0.000000e+00> : vector<8x288xf32>
    %14 = tpu.matmul %13, %12, %cst {dimension_numbers = #tpu.dot_dimension_numbers<[1], [0], [0], [1], [0, 0, 1, 1], [], []>} : vector<8x72xbf16>, vector<72x288xbf16>, vector<8x288xf32> -> vector<8x288xf32>
    %c0_4 = arith.constant 0 : index
    %c0_5 = arith.constant 0 : index
    %15 = vector.load %arg3[%c0_4, %c0_5] : memref<8x1xf32, #tpu.memory_space<vmem>>, vector<8x1xf32>
    %16 = vector.broadcast %15 : vector<8x1xf32> to vector<8x288xf32>
    %17 = arith.addf %14, %16 : vector<8x288xf32>
    %cst_6 = arith.constant 0.000000e+00 : f32
    %18 = vector.broadcast %cst_6 : f32 to vector<8x288xf32>
    %19 = arith.maximumf %17, %18 : vector<8x288xf32>
    %c0_7 = arith.constant 0 : index
    %c0_8 = arith.constant 0 : index
    %20 = vector.load %arg6[%c0_7, %c0_8] : memref<1x288xf32, #tpu.memory_space<vmem>>, vector<1x288xf32>
    %21 = vector.broadcast %20 : vector<1x288xf32> to vector<8x288xf32>
    %22 = arith.mulf %19, %21 : vector<8x288xf32>
    %cst_9 = arith.constant 0.000000e+00 : f32
    %23 = vector.broadcast %cst_9 : f32 to vector<8x19xf32>
    %cst_10 = arith.constant 0.000000e+00 : f32
    %24 = vector.broadcast %cst_10 : f32 to vector<8x19xf32>
    %25 = tpu.concatenate %23, %22, %24 in 1 : vector<8x19xf32>, vector<8x288xf32>, vector<8x19xf32> -> vector<8x326xf32>
    %26 = vector.extract_strided_slice %25 {offsets = [0, 0], sizes = [8, 288], strides = [1, 1]} : vector<8x326xf32> to vector<8x288xf32>
    %27 = vector.extract_strided_slice %25 {offsets = [0, 1], sizes = [8, 288], strides = [1, 1]} : vector<8x326xf32> to vector<8x288xf32>
    %28 = vector.extract_strided_slice %25 {offsets = [0, 2], sizes = [8, 288], strides = [1, 1]} : vector<8x326xf32> to vector<8x288xf32>
    %29 = vector.extract_strided_slice %25 {offsets = [0, 18], sizes = [8, 288], strides = [1, 1]} : vector<8x326xf32> to vector<8x288xf32>
    %30 = vector.extract_strided_slice %25 {offsets = [0, 19], sizes = [8, 288], strides = [1, 1]} : vector<8x326xf32> to vector<8x288xf32>
    %31 = vector.extract_strided_slice %25 {offsets = [0, 20], sizes = [8, 288], strides = [1, 1]} : vector<8x326xf32> to vector<8x288xf32>
    %32 = vector.extract_strided_slice %25 {offsets = [0, 36], sizes = [8, 288], strides = [1, 1]} : vector<8x326xf32> to vector<8x288xf32>
    %33 = vector.extract_strided_slice %25 {offsets = [0, 37], sizes = [8, 288], strides = [1, 1]} : vector<8x326xf32> to vector<8x288xf32>
    %34 = vector.extract_strided_slice %25 {offsets = [0, 38], sizes = [8, 288], strides = [1, 1]} : vector<8x326xf32> to vector<8x288xf32>
    %35 = tpu.concatenate %26, %27, %28, %29, %30, %31, %32, %33, %34 in 0 : vector<8x288xf32>, vector<8x288xf32>, vector<8x288xf32>, vector<8x288xf32>, vector<8x288xf32>, vector<8x288xf32>, vector<8x288xf32>, vector<8x288xf32>, vector<8x288xf32> -> vector<72x288xf32>
    %36 = arith.truncf %35 : vector<72x288xf32> to vector<72x288xbf16>
    %c0_11 = arith.constant 0 : index
    %c0_12 = arith.constant 0 : index
    %37 = vector.load %arg4[%c0_11, %c0_12] : memref<8x72xbf16, #tpu.memory_space<vmem>>, vector<8x72xbf16>
    %cst_13 = arith.constant dense<0.000000e+00> : vector<8x288xf32>
    %38 = tpu.matmul %37, %36, %cst_13 {dimension_numbers = #tpu.dot_dimension_numbers<[1], [0], [0], [1], [0, 0, 1, 1], [], []>} : vector<8x72xbf16>, vector<72x288xbf16>, vector<8x288xf32> -> vector<8x288xf32>
    %c0_14 = arith.constant 0 : index
    %c0_15 = arith.constant 0 : index
    %39 = vector.load %arg5[%c0_14, %c0_15] : memref<8x1xf32, #tpu.memory_space<vmem>>, vector<8x1xf32>
    %40 = vector.broadcast %39 : vector<8x1xf32> to vector<8x288xf32>
    %41 = arith.addf %38, %40 : vector<8x288xf32>
    %cst_16 = arith.constant 0.000000e+00 : f32
    %42 = vector.broadcast %cst_16 : f32 to vector<8x288xf32>
    %43 = arith.maximumf %41, %42 : vector<8x288xf32>
    %c0_17 = arith.constant 0 : index
    %c0_18 = arith.constant 0 : index
    %c0_19 = arith.constant 0 : index
    %44 = vector.load %arg7[%c0_17, %c0_18, %c0_19] : memref<1x8x288xf32, #tpu.memory_space<vmem>>, vector<1x8x288xf32>
    %45 = vector.shape_cast %44 : vector<1x8x288xf32> to vector<8x288xf32>
    %46 = vector.shape_cast %43 : vector<8x288xf32> to vector<1x8x288xf32>
    tpu.vector_store %arg7[%c0_17, %c0_18, %c0_19], %46 {strides = array<i32>} : memref<1x8x288xf32, #tpu.memory_space<vmem>>, vector<1x8x288xf32>,
    return
  }
  func.func @transform_0(%arg0: i32) -> (i32, i32, i32) {
    %c0_i32 = arith.constant 0 : i32
    %c0_i32_0 = arith.constant 0 : i32
    %c0_i32_1 = arith.constant 0 : i32
    return %arg0, %c0_i32, %c0_i32_0 : i32, i32, i32
  }
  func.func @transform_1(%arg0: i32) -> (i32, i32) {
    %c0_i32 = arith.constant 0 : i32
    %c0_i32_0 = arith.constant 0 : i32
    %c0_i32_1 = arith.constant 0 : i32
    return %c0_i32, %c0_i32_0 : i32, i32
  }
  func.func @transform_2(%arg0: i32) -> (i32, i32) {
    %c0_i32 = arith.constant 0 : i32
    %c0_i32_0 = arith.constant 0 : i32
    %c0_i32_1 = arith.constant 0 : i32
    return %c0_i32, %c0_i32_0 : i32, i32
  }
  func.func @transform_3(%arg0: i32) -> (i32, i32) {
    %c0_i32 = arith.constant 0 : i32
    %c0_i32_0 = arith.constant 0 : i32
    %c0_i32_1 = arith.constant 0 : i32
    return %c0_i32, %c0_i32_0 : i32, i32
  }
  func.func @transform_4(%arg0: i32) -> (i32, i32) {
    %c0_i32 = arith.constant 0 : i32
    %c0_i32_0 = arith.constant 0 : i32
    %c0_i32_1 = arith.constant 0 : i32
    return %c0_i32, %c0_i32_0 : i32, i32
  }
  func.func @transform_5(%arg0: i32) -> (i32, i32) {
    %c0_i32 = arith.constant 0 : i32
    %c0_i32_0 = arith.constant 0 : i32
    %c0_i32_1 = arith.constant 0 : i32
    return %c0_i32, %c0_i32_0 : i32, i32
  }
  func.func @transform_6(%arg0: i32) -> (i32, i32, i32) {
    %c0_i32 = arith.constant 0 : i32
    %c0_i32_0 = arith.constant 0 : i32
    %c0_i32_1 = arith.constant 0 : i32
    return %arg0, %c0_i32, %c0_i32_0 : i32, i32, i32
  }
}

</mosaic_0001>

<bundles_post_ra>
// kernel: tpu_custom_call.1
= control target key start
LH: loop header
LB: loop body
LE: loop exit
PB: predicated region body
PF: predicated region fallthrough
CT: control target
= control target key end

     0   :  { %11 = vsyncpa [#allocation3], 0  ;;  %s1466_s0 = inlined_call_operand.hbm [shape: f32[2,8,326], index: 0, kind: input, shape index: {}]   ;;  %s1467_s1 = inlined_call_operand.vmem [shape: bf16[8,72], index: 1, kind: input, shape index: {}]   ;;  %s1468_s2 = inlined_call_operand.vmem [shape: f32[8,1], index: 2, kind: input, shape index: {}]   ;;  %s1469_s3 = inlined_call_operand.vmem [shape: bf16[8,72], index: 3, kind: input, shape index: {}]   ;;  %s1470_s4 = inlined_call_operand.vmem [shape: f32[8,1], index: 4, kind: input, shape index: {}]   ;;  %s1471_s5 = inlined_call_operand.vmem [shape: f32[1,288], index: 5, kind: input, shape index: {}]   ;;  %s1472_s6 = inlined_call_operand.hbm [shape: f32[2,8,288], index: 6, kind: output, shape index: {}]  }
   0x1   :  { %13 = vsyncpa [#allocation3 + $0x1], 0 }
   0x2   :  { %14 = vsyncpa [#allocation4], 0 }
   0x3   :  { %16 = vsyncpa [#allocation4 + $0x1], 0  ;;  %s1180_s21 = smov 0   ;;  %s1182_s22 = smov 0  }
   0x4   :  { %s1184_s23 = smov 0   ;;  %s1186_s24 = smov 0  }
   0x5 LB: > { %s1201_s25 = sadd.s32 4294967295, %s1128_s24   ;;  %s826_s26 = sadd.s32 4294967294, %s1128_s24   ;;  %s1128_s24 = sphi %s1186_s24, %s1488_s24   ;;  %s1124_s23 = sphi %s1184_s23, %s1487_s23   ;;  %s1120_s22 = sphi %s1182_s22, %s1486_s22   ;;  %s1116_s21 = sphi %s1180_s21, %s1485_s21  }
   0x6   : > { %s1205_s27 = sadd.s32 1, %s1128_s24   ;;  %s29_s28 = sadd.s32 1, %s1124_s23 }
   0x7   : > { %s26_s29 = ssub.s32 %s1128_s24, %s1205_s27  ;;  %p36_p0 = scmp.ne.s32.totalorder %s1124_s23, %s1120_s22 }
   0x8   : > { %p27_p1 = scmp.eq.s32.totalorder %s26_s29, 0  ;;  %p37_p2 = scmp.eq.s32.totalorder %s1128_s24, 0 }
   0x9   : > { %p42_p3 = scmp.ne.s32.totalorder %s1120_s22, %s1116_s21  ;;  %p43_p4 = scmp.eq.s32.totalorder %s1201_s25, 0 }
   0xa   : > { %s1217_s30 = scalar_select %p27_p1, %s1124_s23, %s29_s28  }
   0xb   : > { %p38_p5 = por %p37_p2, %p36_p0  ;;  %p1219_p6 = por %p43_p4, %p42_p3 }
   0xc   : > { %p171_p7 = scmp.eq.s32.totalorder %s1201_s25, 1  ;;  %p177_p8 = scmp.eq.s32.totalorder %s826_s26, 1 }
   0xd   : > { %s1475_s7 = scalar_select %p1219_p6, 1, 0 }
   0xe   : > { %p903_p10 = scmp.lt.s32.totalorder %s1128_s24, 2  ;;  %p1226_p11 = por %p171_p7, %p36_p0 }
   0xf   : > { %p1230_p12 = por %p177_p8, %p42_p3  ;;  %s212_s10 = sand.u32 1, %s1124_s23  }
  0x10   : > { %s1476_s8 = scalar_select %p1226_p11, 1, 0 }
  0x11   : > { %s1477_s9 = scalar_select %p1230_p12, 1, 0 }
  0x12   : > { %s888_s11 = smul.u32 384, %s1128_s24  ;;  %p1241_p13 = pnand %p903_p10, %p38_p5 }
  0x13   : > { %s887_s12 = smul.u32 24, %s212_s10  ;;  %s213_s19 = scalar_lea.sflag [#allocation3], %s212_s10 }
  0x14   : > { %s1239_s15 = scalar_lea.hbm %s1466_s0, %s888_s11  ;;  %p1038_p3 = pneg %p1241_p13 }
  0x15   : > { %s216_s17 = scalar_lea.vmem [#allocation2], %s887_s12  ;;  %s1036_s20 = scalar_lea.hbm %s1239_s15, 384 }
  0x16   : > { %s224_s18 = sshll.u32 %s216_s17, 4  ;;  %p1037_p2 = scmp.ne.s32.totalorder %s1239_s15, %s1036_s20  ;;  %s225_s18 = int_to_ptr.vmem [resolvable:$true] %s224_s18 }
  0x17   : > { %s1041_s29 = scalar_lea.hbm %s1466_s0, 768  ;;  %p1042_p5 = scmp.lt.s32.totalorder %s1239_s15, %s1466_s0 }
  0x18   : > { %p1039_p4 = pnand %p1038_p3, %p1037_p2  ;;  %p1043_p8 = scmp.lt.s32.totalorder %s1041_s29, %s1036_s20 }
  0x1a   : > { %p1040_p7 = pneg %p1039_p4  ;;  %p1044_p10 = por %p1043_p8, %p1042_p5 }
  0x1c   : > { %p1045_p9 = pnand %p1044_p10, %p1040_p7 }
  0x1e   : > { %1048 = shalt.err (!%p1045_p9)
}
  0x1f   : > { %s1049_s12 = scalar_lea.vmem %s225_s18, 384  ;;  %s1130_s10 = smov [#allocation2]  }
  0x20   : > { %p1050_p0 = scmp.ne.s32.totalorder %s225_s18, %s1049_s12  ;;  %s1054_s14 = sshll.u32 %s1130_s10, 4  ;;  %s1055_s14 = int_to_ptr.vmem [resolvable:$false] %s1054_s14 }
  0x21   : > { %s1056_s17 = scalar_lea.vmem %s1055_s14, 768  ;;  %p1057_p2 = scmp.lt.s32.totalorder %s225_s18, %s1055_s14 }
  0x22   : > { %p1052_p1 = pnand %p1050_p0, %p1038_p3  ;;  %p1058_p4 = scmp.lt.s32.totalorder %s1056_s17, %s1049_s12 }
  0x24   : > { %p1053_p12 = pneg %p1052_p1  ;;  %p1059_p11 = por %p1058_p4, %p1057_p2 }
  0x26   : > { %p1060_p6 = pnand %p1059_p11, %p1053_p12 }
  0x28   : > { %1063 = shalt.err (!%p1060_p6)
}
  0x29   : > { %898 = dma.hbm_to_vmem [thread:$0]  (!%p1241_p13), %s1239_s15, 384, %s225_s18, %s213_s19  }
  0x2a   : > { %p1479_p9 = scmp.lt.s32.totalorder %s1128_s24, 3  ;;  %p1480_p7 = scmp.ge.s32.totalorder %s1128_s24, 1 }
  0x2c   : > { %p230_p5 = pnand %p1480_p7, %p1479_p9 }
  0x2d   : > { %s1266_s20 = sand.u32 (!%p230_p5), 1, %s1120_s22   ;;  %p1481_p6 = scmp.ne.s32.totalorder (!%p230_p5), %s1475_s7, 0 }
  0x2e   : > { %233 = sbr.rel (%p230_p5) target bundleno = 895 (0x37f), region = 44  ;;  %s236_s28 = scalar_lea.sflag (!%p230_p5), [#allocation3], %s1266_s20 }
  0x2f   : > { %s889_s26 = smul.u32 (!%p230_p5), 24, %s1266_s20 }
  0x31   : > { %s239_s29 = scalar_lea.vmem (!%p230_p5), [#allocation2], %s889_s26 }
  0x33   : > { %1107 = dma.done.wait (%p1481_p6), %s236_s28, 384  }
  0x34   : > { %1109 = vsyncadd (%p1481_p6), %s236_s28, 4294966912  ;;  %v1131_v0 = vmov 0.0   ;;  %v1277_v1 = vld [vmem:[%s239_s29 + $0x8] sm:$0xff]  ;;  %v1279_v2 = vld [vmem:[%s239_s29 + $0x10] sm:$0xff]  ;;  %s1132_s15 = smov 92   ;;  %s1133_s7 = smov 90  }
  0x35   : > { %859 = vmatprep.subr.bf16.mxu1 %v1131_v0  ;;  %v1281_v3 = vld [vmem:[%s239_s29] sm:$0xff]  ;;  %v955_v4 = vpack.i.bf16 %v1279_v2, %v1277_v1  ;;  %s1134_s16 = smov 91   ;;  %s1135_s18 = smov 108   ;;  %vm1139_vm0 = vmmov 0   ;;  %v1140_v6 = vmov 0   ;;  %vm341_vm1 = vcmask 752640  }
  0x36   : > { %v950_v5 = vpack.i.bf16 %v1277_v1, %v1281_v3  ;;  %s1136_s19 = smov 109   ;;  %s1137_s11 = smov 110   ;;  %869 = vmatprep.mubr.msk.bf16.mxu1 %vm1139_vm0, %v1131_v0  ;;  %439 = vmatprep.mubr.bf16.mxu0 %v1140_v6  ;;  %v387_v7 = vld [vmem:[%s1468_s2] sm:$0xff]  ;;  %vm365_vm2 = vcmask 736256   ;;  %vm353_vm3 = vcmask 744448   ;;  %vm397_vm4 = vcmask 1043456  }
  0x37   : > { %956 = vrot.lane.b32.xlu1 %v955_v4, %s1132_s15  ;;  %s1138_s13 = smov 126   ;;  %990 = vset.pattern.permute.xlu0 %v1140_v6  ;;  %s1141_s12 = smov 127   ;;  %vm329_vm5 = vcmask 883712   ;;  %vm317_vm6 = vcmask 891904   ;;  %vm305_vm7 = vcmask 900096   ;;  %vm293_vm8 = vcmask 1031168  }
  0x38   : > { %951 = vrot.lane.b32.xlu0 %v950_v5, %s1133_s7  ;;  %vm281_vm9 = vcmask 1039360   ;;  %vm393_vm10 = vcmask 588800   ;;  %s1142_s14 = smov 19   ;;  %vm520_vm11 = vcmask 154624   ;;  %vm527_vm12 = vcmask 416768   ;;  %p1482_p12 = scmp.ne.s32.totalorder %s1476_s8, 0 }
  0x39   : > { %vm835_vm13 = vmneg %vm520_vm11  ;;  %vm1143_vm14 = vmmov 1  }
  0x3a   : > { %vm840_vm15 = vmpackc.low %vm1143_vm14, %vm527_vm12 }
  0x3b   : > { %961 = vrot.lane.b32.xlu1 %v955_v4, %s1134_s16 }
  0x3c   : > { %363 = vrot.lane.b32.xlu0 %v1279_v2, %s1133_s7 }
  0x3f   : > { %347 = vrot.lane.b32.xlu1 %v1281_v3, %s1134_s16 }
  0x40   : > { %335 = vrot.lane.b32.xlu0 %v1281_v3, %s1132_s15 }
  0x43   : > { %971 = vrot.lane.b32.xlu1 %v955_v4, %s1135_s18 }
  0x44   : > { %966 = vrot.lane.b32.xlu0 %v955_v4, %s1136_s19 }
  0x47   : > { %323 = vrot.lane.b32.xlu1 %v1281_v3, %s1135_s18 }
  0x48   : > { %311 = vrot.lane.b32.xlu0 %v1281_v3, %s1136_s19 }
  0x4b   : > { %981 = vrot.lane.b32.xlu1 %v955_v4, %s1137_s11 }
  0x4c   : > { %976 = vrot.lane.b32.xlu0 %v955_v4, %s1138_s13 }
  0x4f   : > { %299 = vrot.lane.b32.xlu1 %v1281_v3, %s1137_s11 }
  0x50   : > { %287 = vrot.lane.b32.xlu0 %v1281_v3, %s1138_s13 }
  0x53   : > { %275 = vrot.lane.b32.xlu1 %v1281_v3, %s1141_s12 }
  0x54   : > { %986 = vrot.lane.b32.xlu0 %v955_v4, %s1141_s12 }
  0x58   : > { %390 = vperm.xlu0 %990, %v387_v7  }
  0xa9   : > { %v957_v8 = vpop.permute.xlu1 %956 }
  0xaa   : > { %v952_v9 = vpop.permute.xlu0 %951  ;;  %v959_v10 = vunpack.i.h.bf16 %v957_v8  ;;  %v958_v11 = vunpack.i.l.bf16 %v957_v8 }
  0xab   : > { %v954_v12 = vunpack.i.h.bf16 %v952_v9  ;;  %v953_v13 = vunpack.i.l.bf16 %v952_v9 }
  0xac   : > { %v343_v18 = vsel %vm341_vm1, %v958_v11, %v959_v10 }
  0xad   : > { %v366_v14 = vsel %vm365_vm2, %v953_v13, %v954_v12  ;;  %v962_v15 = vpop.permute.xlu1 %961 }
  0xae   : > { %v364_v16 = vpop.permute.xlu0 %363  ;;  %v383_v17 = vpack.c.bf16 %v366_v14, %v366_v14  ;;  %v964_v19 = vunpack.i.h.bf16 %v962_v15  ;;  %v963_v20 = vunpack.i.l.bf16 %v962_v15  ;;  %v386_v14 = vld [vmem:[%s1467_s1] sm:$0xf] }
  0xaf   : > { %v385_v21 = vpack.c.bf16 %v364_v16, %v364_v16  ;;  %v367_v22 = vsel %vm365_vm2, %v954_v12, %v364_v16 }
  0xb0   : > { %v384_v23 = vpack.c.bf16 %v367_v22, %v367_v22  ;;  %v355_v25 = vsel %vm353_vm3, %v963_v20, %v964_v19  ;;  %v399_v28 = vsel %vm397_vm4, %v383_v17, 0  ;;  %v382_v32 = vpack.c.bf16 %v964_v19, %v959_v10 }
  0xb1   : > { %v405_v24 = vsel %vm397_vm4, %v385_v21, 0  ;;  %v348_v26 = vpop.permute.xlu1 %347  ;;  %v381_v29 = vpack.c.bf16 %v355_v25, %v343_v18 }
  0xb2   : > { %860 = vmatpush3.bf16.msra.mxu1 %v405_v24  ;;  %v336_v27 = vpop.permute.xlu0 %335  ;;  %831 = vmatprep.subr.msk.bf16.mxu0 %vm397_vm4, %v384_v23  ;;  %v354_v30 = vsel %vm353_vm3, %v348_v26, %v963_v20  ;;  %v491_v20 = vld [vmem:[%s1471_s5] sm:$0x7] }
  0xb3   : > { %v342_v31 = vsel %vm341_vm1, %v336_v27, %v958_v11  ;;  %414 = vmatpush1.bf16.msra.mxu0 %v399_v28  ;;  %861 = vmatprep.subr.bf16.mxu1 %v1131_v0 }
  0xb4   : > { %v380_v33 = vpack.c.bf16 %v354_v30, %v342_v31  ;;  %415 = vmatprep.subr.bf16.mxu0 %v381_v29 }
  0xb5   : > { %v972_v34 = vpop.permute.xlu1 %971 }
  0xb6   : > { %862 = vmatpush3.bf16.msra.mxu1 %v382_v32  ;;  %v967_v35 = vpop.permute.xlu0 %966  ;;  %v974_v36 = vunpack.i.h.bf16 %v972_v34  ;;  %v973_v37 = vunpack.i.l.bf16 %v972_v34 }
  0xb7   : > { %v969_v38 = vunpack.i.h.bf16 %v967_v35  ;;  %v968_v39 = vunpack.i.l.bf16 %v967_v35  ;;  %416 = vmatpush1.bf16.msra.mxu0 %v380_v33  ;;  %863 = vmatprep.subr.bf16.mxu1 %v1131_v0 }
  0xb8   : > { %v331_v42 = vsel %vm329_vm5, %v973_v37, %v974_v36 }
  0xb9   : > { %v379_v40 = vpack.c.bf16 %v974_v36, %v969_v38  ;;  %v319_v41 = vsel %vm317_vm6, %v968_v39, %v969_v38  ;;  %v324_v43 = vpop.permute.xlu1 %323 }
  0xba   : > { %v312_v44 = vpop.permute.xlu0 %311  ;;  %v378_v45 = vpack.c.bf16 %v331_v42, %v319_v41  ;;  %v330_v46 = vsel %vm329_vm5, %v324_v43, %v973_v37 }
  0xbb   : > { %v318_v47 = vsel %vm317_vm6, %v312_v44, %v968_v39  ;;  %864 = vmatpush3.bf16.msra.mxu1 %v379_v40 }
  0xbc   : > { %v377_v48 = vpack.c.bf16 %v330_v46, %v318_v47  ;;  %417 = vmatprep.subr.bf16.mxu0 %v378_v45  ;;  %865 = vmatprep.subr.bf16.mxu1 %v1131_v0 }
  0xbd   : > { %v982_v49 = vpop.permute.xlu1 %981 }
  0xbe   : > { %v977_v50 = vpop.permute.xlu0 %976  ;;  %418 = vmatpush1.bf16.msra.mxu0 %v377_v48  ;;  %v984_v51 = vunpack.i.h.bf16 %v982_v49  ;;  %v983_v52 = vunpack.i.l.bf16 %v982_v49  ;;  %v635_v49 = vld [vmem:[%s1470_s4] sm:$0xff] }
  0xbf   : > { %v979_v53 = vunpack.i.h.bf16 %v977_v50  ;;  %v978_v54 = vunpack.i.l.bf16 %v977_v50 }
  0xc0   : > { %v307_v57 = vsel %vm305_vm7, %v983_v52, %v984_v51 }
  0xc1   : > { %v376_v55 = vpack.c.bf16 %v984_v51, %v979_v53  ;;  %v295_v56 = vsel %vm293_vm8, %v978_v54, %v979_v53  ;;  %v300_v58 = vpop.permute.xlu1 %299 }
  0xc2   : > { %v288_v59 = vpop.permute.xlu0 %287  ;;  %v375_v60 = vpack.c.bf16 %v307_v57, %v295_v56  ;;  %v306_v61 = vsel %vm305_vm7, %v300_v58, %v983_v52 }
  0xc3   : > { %v294_v62 = vsel %vm293_vm8, %v288_v59, %v978_v54  ;;  %866 = vmatpush3.bf16.msra.mxu1 %v376_v55 }
  0xc4   : > { %v374_v63 = vpack.c.bf16 %v306_v61, %v294_v62  ;;  %419 = vmatprep.subr.bf16.mxu0 %v375_v60  ;;  %867 = vmatprep.subr.bf16.mxu1 %v1131_v0 }
  0xc5   : > { %v276_v5 = vpop.permute.xlu1 %275 }
  0xc6   : > { %v987_v4 = vpop.permute.xlu0 %986  ;;  %420 = vmatpush1.bf16.msra.mxu0 %v374_v63 }
  0xc7   : > { %v989_v7 = vunpack.i.h.bf16 %v987_v4  ;;  %v988_v8 = vunpack.i.l.bf16 %v987_v4 }
  0xc9   : > { %v373_v9 = vpack.c.bf16 %v989_v7, %v1279_v2  ;;  %v282_v10 = vsel %vm281_vm9, %v276_v5, %v988_v8  ;;  %v283_v11 = vsel %vm281_vm9, %v988_v8, %v989_v7 }
  0xca   : > { %v371_v12 = vpack.c.bf16 %v282_v10, %v1281_v3  ;;  %v372_v13 = vpack.c.bf16 %v283_v11, %v1277_v1  ;;  %v493_v1 = vlaneseq }
  0xcb   : > { %868 = vmatpush3.bf16.msra.mxu1 %v373_v9 }
  0xcc   : > { %421 = vmatprep.subr.bf16.mxu0 %v372_v13  ;;  %873 = vmatprep.subr.bf16.mxu1 %v1131_v0  ;;  %v494_v2 = vshrl.u32 %v493_v1, 7 }
  0xcd   : > { %422 = vmatpush1.bf16.msra.mxu0 %v371_v12 }
  0xce   : > { %870 = vmatmul.mubr.msk.bf16.vlgmr.msra.gmra.mxu1 %vm393_vm10, %v386_v14  ;;  %v503_v3 = vsub.s32 2, %v494_v2  ;;  %v499_v18 = vsub.s32 1, %v494_v2  ;;  %v495_v30 = vsub.s32 0, %v494_v2 }
  0xcf   : > { %883 = vmatprep.mubr.msk.bf16.mxu1 %vm1139_vm0, %v1131_v0  ;;  %vm836_vm0 = vmpackc.low %vm1143_vm14, %vm835_vm13 }
  0xd0   : > { %832 = vmatmul.mubr.msk.bf16.vlgmr.msra.gmra.mxu0 %vm393_vm10, %v386_v14  ;;  %v504_v23 = vrot.slane %v491_v20, %v503_v3  ;;  %v500_v27 = vrot.slane %v491_v20, %v499_v18  ;;  %v496_v36 = vrot.slane %v491_v20, %v495_v30 }
  0xd1   : > { %685 = vmatprep.mubr.bf16.mxu0 %v1140_v6 }
  0xd3   : > { %v391_v16 = vpop.permute.xlu0 %390 }
 0x18e   : > { %v482_v15 = vpop.f32.mrf.mxu1 }
 0x18f   : > { %v483_v17 = vadd.f32 %v482_v15, %v391_v16 }
 0x190   : > { %v441_v19 = vpop.f32.mrf.mxu0  ;;  %v871_v21 = vpop.f32.mrf.mxu1 }
 0x191   : > { %v490_v22 = vmax.f32 %v483_v17, 0.0  ;;  %v442_v29 = vadd.f32 %v441_v19, %v391_v16 }
 0x192   : > { %v443_v24 = vpop.f32.mrf.mxu0  ;;  %v485_v25 = vpop.f32.mrf.mxu1 }
 0x193   : > { %v444_v26 = vadd.f32 %v443_v24, %v391_v16  ;;  %v510_v32 = vmul.f32 %v504_v23, %v490_v22  ;;  %v488_v35 = vmax.f32 %v442_v29, 0.0 }
 0x194   : > { %v445_v6 = vpop.f32.mrf.mxu0  ;;  %v872_v28 = vpop.f32.mrf.mxu1 }
 0x195   : > { %v489_v31 = vmax.f32 %v444_v26, 0.0  ;;  %v508_v38 = vmul.f32 %v496_v36, %v488_v35 }
 0x196   : > { %v446_v33 = vpop.f32.mrf.mxu0 }
 0x197   : > { %v509_v34 = vmul.f32 %v500_v27, %v489_v31 }
 0x199   : > { %v991_v37 = vpack.i.bf16 %v510_v32, %v509_v34 }
 0x19b   : > { %992 = vrot.lane.b32.xlu1 %v991_v37, %s1142_s14 }
 0x19f   : > { %514 = vrot.lane.b32.xlu1 %v508_v38, %s1142_s14 }
 0x20d   : > { %v993_v39 = vpop.permute.xlu1 %992 }
 0x20e   : > { %v995_v42 = vunpack.i.h.bf16 %v993_v39  ;;  %v994_v43 = vunpack.i.l.bf16 %v993_v39 }
 0x210   : > { %v1363_v44 = vsel %vm520_vm11, %v994_v43, %v995_v42 }
 0x211   : > { %v1356_v40 = vpop.permute.xlu1 %514  ;;  %v528_v45 = vsel %vm527_vm12, %v1363_v44, 0.0 }
 0x212   : > { %v526_v41 = vsel %vm520_vm11, 0.0, %v1356_v40  ;;  %v1371_v46 = vsel %vm520_vm11, %v1356_v40, %v994_v43 }
 0x213   : > { %597 = vrot.lane.b32.xlu1 %v526_v41, %s1134_s16  ;;  %586 = vrot.lane.b32.xlu0 %v526_v41, %s1132_s15  ;;  %v1006_v47 = vpack.i.bf16 %v528_v45, %v1371_v46  ;;  %v996_v48 = vpack.i.bf16 %v1371_v46, %v526_v41 }
 0x217   : > { %575 = vrot.lane.b32.xlu1 %v526_v41, %s1135_s18  ;;  %564 = vrot.lane.b32.xlu0 %v526_v41, %s1136_s19 }
 0x21b   : > { %612 = vrot.lane.b32.xlu1 %v528_v45, %s1133_s7  ;;  %542 = vrot.lane.b32.xlu0 %v526_v41, %s1138_s13 }
 0x21f   : > { %1007 = vrot.lane.b32.xlu1 %v1006_v47, %s1134_s16  ;;  %997 = vrot.lane.b32.xlu0 %v996_v48, %s1133_s7 }
 0x223   : > { %1017 = vrot.lane.b32.xlu1 %v1006_v47, %s1135_s18  ;;  %1002 = vrot.lane.b32.xlu0 %v1006_v47, %s1132_s15  ;;  %s890_s18 = smul.u32 384, %s1201_s25  ;;  %s742_s25 = scalar_lea.sflag [#allocation4], %s1266_s20 }
 0x225   : > { %s1429_s28 = scalar_lea.hbm %s1472_s6, %s890_s18 }
 0x227   : > { %1027 = vrot.lane.b32.xlu1 %v1006_v47, %s1137_s11  ;;  %1012 = vrot.lane.b32.xlu0 %v1006_v47, %s1136_s19  ;;  %s267_s19 = scalar_lea.vmem [#allocation5], %s889_s26  ;;  %s1144_s26 = smov [#allocation5]  }
 0x228   : > { %s1068_s10 = sshll.u32 %s1144_s26, 4  ;;  %s1069_s10 = int_to_ptr.vmem [resolvable:$false] %s1068_s10 }
 0x229   : > { %s1070_s14 = scalar_lea.vmem %s1069_s10, 768 }
 0x22b   : > { %553 = vrot.lane.b32.xlu1 %v526_v41, %s1137_s11  ;;  %1022 = vrot.lane.b32.xlu0 %v1006_v47, %s1138_s13  ;;  %s756_s11 = sshll.u32 %s267_s19, 4  ;;  %s757_s11 = int_to_ptr.vmem [resolvable:$true] %s756_s11 }
 0x22c   : > { %s1064_s29 = scalar_lea.vmem %s757_s11, 384  ;;  %p1071_p1 = scmp.lt.s32.totalorder %s757_s11, %s1069_s10 }
 0x22d   : > { %p1065_p11 = scmp.ne.s32.totalorder %s757_s11, %s1064_s29  ;;  %p1072_p3 = scmp.lt.s32.totalorder %s1070_s14, %s1064_s29 }
 0x22f   : > { %531 = vrot.lane.b32.xlu1 %v526_v41, %s1141_s12  ;;  %1032 = vrot.lane.b32.xlu0 %v1006_v47, %s1141_s12  ;;  %p1066_p13 = pnand %p1065_p11, %p1482_p12  ;;  %p1073_p8 = por %p1072_p3, %p1071_p1 }
 0x231   : > { %p1067_p0 = pneg %p1066_p13 }
 0x233   : > { %638 = vperm.xlu0 %990, %v635_v49   ;;  %p1074_p10 = pnand %p1073_p8, %p1067_p0 }
 0x285   : > { %v598_v50 = vpop.permute.xlu1 %597  ;;  %v587_v51 = vpop.permute.xlu0 %586 }
 0x289   : > { %v576_v52 = vpop.permute.xlu1 %575  ;;  %v565_v53 = vpop.permute.xlu0 %564 }
 0x28d   : > { %v613_v54 = vpop.permute.xlu1 %612  ;;  %v543_v55 = vpop.permute.xlu0 %542 }
 0x28e   : > { %v633_v56 = vpack.c.bf16 %v613_v54, %v613_v54 }
 0x290   : > { %v651_v57 = vsel %vm397_vm4, %v633_v56, 0 }
 0x291   : > { %874 = vmatpush3.bf16.msra.mxu1 %v651_v57  ;;  %v1008_v58 = vpop.permute.xlu1 %1007  ;;  %v998_v59 = vpop.permute.xlu0 %997 }
 0x292   : > { %v1000_v60 = vunpack.i.h.bf16 %v998_v59  ;;  %v999_v61 = vunpack.i.l.bf16 %v998_v59  ;;  %875 = vmatprep.subr.bf16.mxu1 %v1131_v0  ;;  %v1010_v62 = vunpack.i.h.bf16 %v1008_v58  ;;  %v1009_v63 = vunpack.i.l.bf16 %v1008_v58 }
 0x294   : > { %v615_v4 = vsel %vm365_vm2, %v1000_v60, %v613_v54  ;;  %v614_v5 = vsel %vm365_vm2, %v999_v61, %v1000_v60  ;;  %v603_v13 = vsel %vm353_vm3, %v598_v50, %v1009_v63  ;;  %v604_v2 = vsel %vm353_vm3, %v1009_v63, %v1010_v62 }
 0x295   : > { %v632_v7 = vpack.c.bf16 %v615_v4, %v615_v4  ;;  %v1018_v8 = vpop.permute.xlu1 %1017  ;;  %v1003_v9 = vpop.permute.xlu0 %1002  ;;  %v631_v10 = vpack.c.bf16 %v614_v5, %v614_v5 }
 0x296   : > { %v1005_v11 = vunpack.i.h.bf16 %v1003_v9  ;;  %v1004_v12 = vunpack.i.l.bf16 %v1003_v9  ;;  %v1019_v14 = vunpack.i.l.bf16 %v1018_v8  ;;  %v1020_v3 = vunpack.i.h.bf16 %v1018_v8 }
 0x297   : > { %834 = vmatprep.subr.msk.bf16.mxu0 %vm397_vm4, %v632_v7  ;;  %v645_v1 = vsel %vm397_vm4, %v631_v10, 0 }
 0x298   : > { %v630_v15 = vpack.c.bf16 %v1010_v62, %v1005_v11  ;;  %v592_v16 = vsel %vm341_vm1, %v587_v51, %v1004_v12  ;;  %660 = vmatpush1.bf16.msra.mxu0 %v645_v1  ;;  %v593_v17 = vsel %vm341_vm1, %v1004_v12, %v1005_v11  ;;  %v581_v24 = vsel %vm329_vm5, %v576_v52, %v1019_v14 }
 0x299   : > { %v628_v18 = vpack.c.bf16 %v603_v13, %v592_v16  ;;  %v1028_v19 = vpop.permute.xlu1 %1027  ;;  %v1013_v20 = vpop.permute.xlu0 %1012  ;;  %v629_v21 = vpack.c.bf16 %v604_v2, %v593_v17  ;;  %v582_v29 = vsel %vm329_vm5, %v1019_v14, %v1020_v3  ;;  %vm739_vm1 = vcmask 261120  }
 0x29a   : > { %v1015_v22 = vunpack.i.h.bf16 %v1013_v20  ;;  %v1014_v23 = vunpack.i.l.bf16 %v1013_v20  ;;  %876 = vmatpush3.bf16.msra.mxu1 %v630_v15  ;;  %v1030_v25 = vunpack.i.h.bf16 %v1028_v19  ;;  %v1029_v26 = vunpack.i.l.bf16 %v1028_v19 }
 0x29b   : > { %661 = vmatprep.subr.bf16.mxu0 %v629_v21  ;;  %877 = vmatprep.subr.bf16.mxu1 %v1131_v0 }
 0x29c   : > { %v627_v27 = vpack.c.bf16 %v1020_v3, %v1015_v22  ;;  %v570_v6 = vsel %vm317_vm6, %v565_v53, %v1014_v23  ;;  %662 = vmatpush1.bf16.msra.mxu0 %v628_v18  ;;  %v571_v28 = vsel %vm317_vm6, %v1014_v23, %v1015_v22  ;;  %v560_v36 = vsel %vm305_vm7, %v1029_v26, %v1030_v25 }
 0x29d   : > { %v625_v30 = vpack.c.bf16 %v581_v24, %v570_v6  ;;  %v554_v31 = vpop.permute.xlu1 %553  ;;  %v1023_v32 = vpop.permute.xlu0 %1022  ;;  %v626_v33 = vpack.c.bf16 %v582_v29, %v571_v28 }
 0x29e   : > { %v1025_v34 = vunpack.i.h.bf16 %v1023_v32  ;;  %v1024_v35 = vunpack.i.l.bf16 %v1023_v32  ;;  %878 = vmatpush3.bf16.msra.mxu1 %v627_v27  ;;  %v559_v37 = vsel %vm305_vm7, %v554_v31, %v1029_v26 }
 0x29f   : > { %663 = vmatprep.subr.bf16.mxu0 %v626_v33  ;;  %879 = vmatprep.subr.bf16.mxu1 %v1131_v0 }
 0x2a0   : > { %v624_v38 = vpack.c.bf16 %v1030_v25, %v1025_v34  ;;  %v548_v39 = vsel %vm293_vm8, %v543_v55, %v1024_v35  ;;  %664 = vmatpush1.bf16.msra.mxu0 %v625_v30  ;;  %v549_v41 = vsel %vm293_vm8, %v1024_v35, %v1025_v34 }
 0x2a1   : > { %v622_v42 = vpack.c.bf16 %v559_v37, %v548_v39  ;;  %v1033_v43 = vpop.permute.xlu0 %1032  ;;  %v623_v45 = vpack.c.bf16 %v560_v36, %v549_v41  ;;  %v532_v49 = vpop.permute.xlu1 %531 }
 0x2a2   : > { %v1035_v47 = vunpack.i.h.bf16 %v1033_v43  ;;  %v1034_v48 = vunpack.i.l.bf16 %v1033_v43  ;;  %880 = vmatpush3.bf16.msra.mxu1 %v624_v38 }
 0x2a3   : > { %665 = vmatprep.subr.bf16.mxu0 %v623_v45  ;;  %881 = vmatprep.subr.bf16.mxu1 %v1131_v0  ;;  %v634_v0 = vld [vmem:[%s1469_s3] sm:$0xf] }
 0x2a4   : > { %v841_v50 = vpack.c.bf16 %v1035_v47, %v1363_v44  ;;  %v537_v51 = vsel %vm281_vm9, %v532_v49, %v1034_v48  ;;  %666 = vmatpush1.bf16.msra.mxu0 %v622_v42  ;;  %v538_v52 = vsel %vm281_vm9, %v1034_v48, %v1035_v47 }
 0x2a5   : > { %v837_v53 = vpack.c.bf16 %v537_v51, %v1356_v40  ;;  %v620_v54 = vpack.c.bf16 %v538_v52, %v1371_v46 }
 0x2a6   : > { %882 = vmatpush3.bf16.msk.msra.mxu1 %vm840_vm15, %v841_v50 }
 0x2a7   : > { %667 = vmatprep.subr.bf16.mxu0 %v620_v54 }
 0x2a8   : > { %838 = vmatpush1.bf16.msk.msra.mxu0 %vm836_vm0, %v837_v53 }
 0x2a9   : > { %884 = vmatmul.mubr.msk.bf16.vlgmr.msra.gmra.mxu1 %vm393_vm10, %v634_v0 }
 0x2ab   : > { %839 = vmatmul.mubr.msk.bf16.vlgmr.msra.gmra.mxu0 %vm393_vm10, %v634_v0 }
 0x2ae   : > { %v639_v44 = vpop.permute.xlu0 %638 }
 0x369   : > { %v728_v55 = vpop.f32.mrf.mxu1 }
 0x36a   : > { %v729_v56 = vadd.f32 %v728_v55, %v639_v44 }
 0x36b   : > { %v687_v40 = vpop.f32.mrf.mxu0  ;;  %v885_v46 = vpop.f32.mrf.mxu1 }
 0x36c   : > { %v736_v57 = vmax.f32 %v729_v56, 0.0  ;;  %v688_v58 = vadd.f32 %v687_v40, %v639_v44 }
 0x36d   : > { %v689_v59 = vpop.f32.mrf.mxu0  ;;  %v731_v60 = vpop.f32.mrf.mxu1 }
 0x36e   : > { %740 = vst.msk [vmem:[%s267_s19 + $0x10] sm:$0xff] %vm739_vm1, %v736_v57  ;;  %v734_v61 = vmax.f32 %v688_v58, 0.0  ;;  %v690_v62 = vadd.f32 %v689_v59, %v639_v44 }
 0x36f   : > { %v691_v63 = vpop.f32.mrf.mxu0  ;;  %v886_v4 = vpop.f32.mrf.mxu1 }
 0x370   : > { %737 = vst [vmem:[%s267_s19] sm:$0xff] %v734_v61  ;;  %v735_v5 = vmax.f32 %v690_v62, 0.0 }
 0x371   : > { %v692_v7 = vpop.f32.mrf.mxu0 }
 0x372   : > { %738 = vst [vmem:[%s267_s19 + $0x8] sm:$0xff] %v735_v5 }
 0x373   : > { %1077 = shalt.err (!%p1074_p10)
}
 0x374   : > { %s1078_s17 = scalar_lea.hbm %s1429_s28, 384  ;;  %s1082_s15 = scalar_lea.hbm %s1472_s6, 768 }
 0x375   : > { %p1079_p2 = scmp.ne.s32.totalorder %s1429_s28, %s1078_s17  ;;  %p1083_p7 = scmp.lt.s32.totalorder %s1429_s28, %s1472_s6 }
 0x376   : > { %p1084_p5 = scmp.lt.s32.totalorder %s1082_s15, %s1078_s17 }
 0x377   : > { %p1080_p4 = pnand %p1079_p2, %p1482_p12 }
 0x378   : > { %p1085_p6 = por %p1084_p5, %p1083_p7 }
 0x379   : > { %p1081_p9 = pneg %p1080_p4 }
 0x37b   : > { %p1086_p11 = pnand %p1085_p6, %p1081_p9 }
 0x37d   : > { %1089 = shalt.err (!%p1086_p11)
}
 0x37e   : > { %893 = dma.vmem_to_hbm [thread:$0]  (%p1482_p12), %s757_s11, 384, %s1429_s28, %s742_s25  }
 0x37f PF: > { %s768_s19 = sand.u32 1, %s1116_s21   ;;  %p1483_p13 = scmp.ne.s32.totalorder %s1477_s9, 0 }
 0x380   : > { %p1484_p0 = scmp.ge.s32.totalorder %s1128_s24, 2  ;;  %s769_s13 = scalar_lea.sflag [#allocation4], %s768_s19 }
 0x382   : > { %p900_p1 = pnand %p1484_p0, %p1483_p13 }
 0x384   : > { %p901_p3 = pneg %p900_p1 }
 0x386   : > { %1111 = dma.done.wait (%p901_p3), %s769_s13, 384  }
 0x387   : > { %1113 = vsyncadd (%p901_p3), %s769_s13, 4294966912  ;;  %p19_p8 = scmp.ge.s32.totalorder %s1205_s27, 4   ;;  %s1485_s21 = smov %s1120_s22 }
 0x388   : > { %s1486_s22 = smov %s1124_s23  ;;  %s1487_s23 = smov %s1217_s30 }
 0x389   : > { %s1488_s24 = smov %s1205_s27  ;;  %21 = sbr.rel (!%p19_p8) target bundleno = 5 (0x5), region = 89 }
 0x38e   :  { %774 = vsyncpa [#allocation3], 1 }
 0x38f   :  { %776 = vsyncpa [#allocation3 + $0x1], 1 }
 0x390   :  { %777 = vsyncpa [#allocation4], 1 }
 0x391   :  { %779 = vsyncpa [#allocation4 + $0x1], 1 }

</bundles_post_ra>
